<compile_context>
chip_gen: v7x
topology: tpu7x:2x2x1
jax: 0.10.0
libtpu: 0.0.40
codegen_flags: <defaults>
</compile_context>

<pallas_src>
import numpy as np
import jax
import jax.numpy as jnp
from jax.experimental import pallas as pl
from jax.experimental.pallas import tpu as pltpu

INPUT_DIM = 86
OUTPUT_DIM = 2
LANE = 128            # lane-dense padded output width
MAX_TILE_B = 128      # MXU M-tile


def _round_up(n, m):
    return ((n + m - 1) // m) * m


def linear_kernel(x_ref, w_ref, b_ref, out_ref):
    # x_ref:  (tile_b, INPUT_DIM)
    # w_ref:  (INPUT_DIM, LANE)   -- (in, out) layout, zero-padded columns
    # b_ref:  (1, LANE)           -- zero-padded bias
    # out_ref:(tile_b, LANE)
    out_ref[...] = (
        jnp.dot(x_ref[...], w_ref[...], preferred_element_type=jnp.float32)
        + b_ref[...]
    )


def logistic_regression_forward(x, weight, bias):
    """x: (B, input_dim) f32; weight: (output_dim, input_dim) (PyTorch layout);
    bias: (output_dim,).  Returns (B, output_dim) logits."""
    x = jnp.asarray(x, jnp.float32)
    B, D = x.shape
    O = weight.shape[0]

    # (in, out) layout, lane-padded to 128 for a lane-dense (unmasked) store.
    w = jnp.zeros((D, LANE), jnp.float32).at[:, :O].set(jnp.asarray(weight, jnp.float32).T)
    b = jnp.zeros((1, LANE), jnp.float32).at[:, :O].set(jnp.asarray(bias, jnp.float32))

    # Batch tiling: full 128-row MXU tiles for large B; for small B just pad to
    # a sublane multiple (8) and use a single grid step.
    tile_b = MAX_TILE_B if B >= MAX_TILE_B else _round_up(B, 8)
    B_pad = _round_up(B, tile_b)
    x_p = jnp.pad(x, ((0, B_pad - B), (0, 0)))

    out = pl.pallas_call(
        linear_kernel,
        out_shape=jax.ShapeDtypeStruct((B_pad, LANE), jnp.float32),
        grid=(B_pad // tile_b,),
        in_specs=[
            pl.BlockSpec((tile_b, D), lambda i: (i, 0)),   # x tile (M dim = batch)
            pl.BlockSpec((D, LANE), lambda i: (0, 0)),     # W (whole, tiny)
            pl.BlockSpec((1, LANE), lambda i: (0, 0)),     # bias
        ],
        out_specs=pl.BlockSpec((tile_b, LANE), lambda i: (i, 0)),
        compiler_params=pltpu.CompilerParams(
            dimension_semantics=("parallel",),
        ),
    )(x_p, w, b)

    return out[:B, :O]


def logistic_regression_reference(x, weight, bias):
    """Pure NumPy reference matching the PyTorch module: x @ W.T + b."""
    x = np.asarray(x, np.float32)
    weight = np.asarray(weight, np.float32)
    bias = np.asarray(bias, np.float32)
    return x @ weight.T + bias[None, :]


if __name__ == "__main__":
    key = jax.random.PRNGKey(0)
    k_w, k_b, k_x = jax.random.split(key, 3)

    # nn.Linear default init: U(-1/sqrt(fan_in), 1/sqrt(fan_in)), weight (out, in).
    bound = 1.0 / np.sqrt(INPUT_DIM)
    weight = jax.random.uniform(k_w, (OUTPUT_DIM, INPUT_DIM), jnp.float32, -bound, bound)
    bias = jax.random.uniform(k_b, (OUTPUT_DIM,), jnp.float32, -bound, bound)

    # Small example batch consistent with the module: (B=2, input_dim=86).
    B = 2
    x = jax.random.normal(k_x, (B, INPUT_DIM), jnp.float32)

    out = logistic_regression_forward(x, weight, bias)
    out = jax.block_until_ready(out)

    ref = logistic_regression_reference(x, weight, bias)
    np.testing.assert_allclose(np.asarray(out), ref, rtol=1e-5, atol=1e-5)

    print("KERNEL_OK")
</pallas_src>

<mosaic_0001>
module attributes {stable_mosaic.version = 11 : i64} {
  func.func @linear_kernel(%arg0: i32, %arg1: memref<8x86xf32, #tpu.memory_space<vmem>>, %arg2: memref<86x128xf32, #tpu.memory_space<vmem>>, %arg3: memref<1x128xf32, #tpu.memory_space<vmem>>, %arg4: memref<8x128xf32, #tpu.memory_space<vmem>>) attributes {dimension_semantics = [#tpu.dimension_semantics<parallel>], iteration_bounds = array<i64: 1>, scalar_prefetch = 0 : i64, scratch_operands = 0 : i64, tpu.core_type = #tpu.core_type<tc>, window_params = [{transform_indices = @transform_0, window_bounds = array<i64: 8, 86>}, {pipeline_mode = #tpu.pipeline_mode<synchronous>, transform_indices = @transform_1, window_bounds = array<i64: 86, 128>}, {pipeline_mode = #tpu.pipeline_mode<synchronous>, transform_indices = @transform_2, window_bounds = array<i64: 1, 128>}, {transform_indices = @transform_3, window_bounds = array<i64: 8, 128>}]} {
    %c0 = arith.constant 0 : index
    %c0_0 = arith.constant 0 : index
    %0 = vector.load %arg1[%c0, %c0_0] : memref<8x86xf32, #tpu.memory_space<vmem>>, vector<8x86xf32>
    %c0_1 = arith.constant 0 : index
    %c0_2 = arith.constant 0 : index
    %1 = vector.load %arg2[%c0_1, %c0_2] : memref<86x128xf32, #tpu.memory_space<vmem>>, vector<86x128xf32>
    %cst = arith.constant dense<0.000000e+00> : vector<8x128xf32>
    %2 = tpu.matmul %0, %1, %cst {dimension_numbers = #tpu.dot_dimension_numbers<[1], [0], [0], [1], [0, 0, 1, 1], [], []>} : vector<8x86xf32>, vector<86x128xf32>, vector<8x128xf32> -> vector<8x128xf32>
    %c0_3 = arith.constant 0 : index
    %c0_4 = arith.constant 0 : index
    %3 = vector.load %arg3[%c0_3, %c0_4] : memref<1x128xf32, #tpu.memory_space<vmem>>, vector<1x128xf32>
    %4 = vector.broadcast %3 : vector<1x128xf32> to vector<8x128xf32>
    %5 = arith.addf %2, %4 : vector<8x128xf32>
    %c0_5 = arith.constant 0 : index
    %c0_6 = arith.constant 0 : index
    %6 = vector.load %arg4[%c0_5, %c0_6] : memref<8x128xf32, #tpu.memory_space<vmem>>, vector<8x128xf32>
    tpu.vector_store %arg4[%c0_5, %c0_6], %5 {strides = array<i32>} : memref<8x128xf32, #tpu.memory_space<vmem>>, vector<8x128xf32>,
    return
  }
  func.func @transform_0(%arg0: i32) -> (i32, i32) {
    %c0_i32 = arith.constant 0 : i32
    %c0_i32_0 = arith.constant 0 : i32
    return %arg0, %c0_i32 : i32, i32
  }
  func.func @transform_1(%arg0: i32) -> (i32, i32) {
    %c0_i32 = arith.constant 0 : i32
    %c0_i32_0 = arith.constant 0 : i32
    %c0_i32_1 = arith.constant 0 : i32
    return %c0_i32, %c0_i32_0 : i32, i32
  }
  func.func @transform_2(%arg0: i32) -> (i32, i32) {
    %c0_i32 = arith.constant 0 : i32
    %c0_i32_0 = arith.constant 0 : i32
    %c0_i32_1 = arith.constant 0 : i32
    return %c0_i32, %c0_i32_0 : i32, i32
  }
  func.func @transform_3(%arg0: i32) -> (i32, i32) {
    %c0_i32 = arith.constant 0 : i32
    %c0_i32_0 = arith.constant 0 : i32
    return %arg0, %c0_i32 : i32, i32
  }
}

</mosaic_0001>

<bundles_post_ra>
// kernel: tpu_custom_call.1
= control target key start
LH: loop header
LB: loop body
LE: loop exit
PB: predicated region body
PF: predicated region fallthrough
CT: control target
= control target key end

     0   :  { %8 = vsyncpa [#allocation3], 0  ;;  %s364_s0 = inlined_call_operand.hbm [shape: f32[8,86], index: 0, kind: input, shape index: {}]   ;;  %s365_s1 = inlined_call_operand.hbm [shape: f32[86,128], index: 1, kind: input, shape index: {}]   ;;  %s366_s2 = inlined_call_operand.vmem [shape: f32[1,128], index: 2, kind: input, shape index: {}]   ;;  %s367_s3 = inlined_call_operand.hbm [shape: f32[8,128], index: 3, kind: output, shape index: {}]  }
   0x1   :  { %9 = vsyncpa [#allocation6], 0 }
   0x2   :  { %10 = vsyncpa [#allocation4], 0  ;;  %s290_s12 = smov [#allocation2]   ;;  %s291_s14 = smov [#allocation5]  }
   0x3   :  { %s17_s13 = sshll.u32 %s290_s12, 4  ;;  %s26_s15 = sshll.u32 %s291_s14, 4  ;;  %s18_s13 = int_to_ptr.vmem [resolvable:$true] %s17_s13  ;;  %s318_s15 = int_to_ptr.vmem [resolvable:$true] %s26_s15 }
   0x4   :  { %s218_s18 = scalar_lea.hbm %s364_s0, 128 }
   0x5   :  { %p219_p0 = scmp.ne.s32.totalorder %s364_s0, %s218_s18  ;;  %p222_p1 = scmp.lt.u32.totalorder %s218_s18, %s364_s0 }
   0x7   :  { %p224_p2 = pnand %p222_p1, %p219_p0 }
   0x9   :  { %227 = shalt.err (!%p224_p2)
}
   0xa   :  { %s228_s23 = scalar_lea.vmem %s18_s13, 128  ;;  %p233_p4 = scmp.lt.s32.totalorder %s18_s13, %s18_s13 }
   0xb   :  { %p229_p3 = scmp.ne.s32.totalorder %s18_s13, %s228_s23  ;;  %p234_p5 = scmp.lt.s32.totalorder %s228_s23, %s228_s23 }
   0xd   :  { %p235_p6 = por %p234_p5, %p233_p4 }
   0xf   :  { %p236_p7 = pnand %p235_p6, %p229_p3 }
  0x11   :  { %239 = shalt.err (!%p236_p7)
}
  0x12   :  { %20 = dma.hbm_to_vmem [thread:$0]  %s364_s0, 128, %s18_s13, [#allocation3]  }
  0x13   :  { %s240_s28 = scalar_lea.hbm %s365_s1, 1408 }
  0x14   :  { %p241_p8 = scmp.ne.s32.totalorder %s365_s1, %s240_s28  ;;  %p244_p9 = scmp.lt.u32.totalorder %s240_s28, %s365_s1 }
  0x16   :  { %p246_p10 = pnand %p244_p9, %p241_p8 }
  0x18   :  { %249 = shalt.err (!%p246_p10)
}
  0x19   :  { %s250_s6 = scalar_lea.vmem %s318_s15, 1408  ;;  %p255_p12 = scmp.lt.s32.totalorder %s318_s15, %s318_s15 }
  0x1a   :  { %p251_p11 = scmp.ne.s32.totalorder %s318_s15, %s250_s6  ;;  %p256_p13 = scmp.lt.s32.totalorder %s250_s6, %s250_s6 }
  0x1c   :  { %p257_p0 = por %p256_p13, %p255_p12 }
  0x1e   :  { %p258_p1 = pnand %p257_p0, %p251_p11 }
  0x20   :  { %261 = shalt.err (!%p258_p1)
}
  0x21   :  { %s292_s0 = smov 128   ;;  %s293_s7 = smov 8  }
  0x22   :  { %32 = dma.hbm_to_vmem [thread:$0]  %s365_s1, 1408, %s318_s15, [#allocation6], %s292_s0, %s292_s0, %s293_s7  }
  0x23   :  { %284 = dma.done.wait [#allocation3], 128  }
  0x24   :  { %285 = vsyncadd [#allocation3], 4294967168 }
  0x25   :  { %286 = dma.done.wait [#allocation6], 1408  }
  0x26   :  { %287 = vsyncadd [#allocation6], 4294965888  ;;  %v294_v0 = vmov 0.0|0.0   ;;  %vm295_vm0 = vmmov 0   ;;  %v296_v1 = vmov 0.0   ;;  %v42_v2 = vld [vmem:[#allocation5] sm:$0xff] }
  0x27   :  { %195 = vmatprep.subr.bf16.mxu0 %v294_v0  ;;  %192 = vmatprep.mubr.msk.f32.mxu0 %vm295_vm0, %v296_v1  ;;  %v43_v3 = vld [vmem:[#allocation5 + $0x8] sm:$0xff]  ;;  %v44_v4 = vld [vmem:[#allocation5 + $0x10] sm:$0xff]  ;;  %v45_v6 = vld [vmem:[#allocation5 + $0x18] sm:$0xff]  ;;  %vm64_vm1 = vcmask 1045504   ;;  %vm60_vm2 = vcmask 703488   ;;  %s297_s11 = smov [#allocation7]  }
  0x28   :  { %v196_v5 = vpack.c.bf16 %v43_v3, %v42_v2  ;;  %v199_v7 = vpack.c.bf16 %v45_v6, %v44_v4  ;;  %v46_v8 = vld [vmem:[#allocation5 + $0x20] sm:$0xff]  ;;  %v47_v9 = vld [vmem:[#allocation5 + $0x28] sm:$0xff]  ;;  %v48_v11 = vld [vmem:[#allocation5 + $0x30] sm:$0xff]  ;;  %s145_s12 = sshll.u32 %s297_s11, 4  ;;  %s146_s12 = int_to_ptr.vmem [resolvable:$true] %s145_s12 }
  0x29   :  { %v202_v10 = vpack.c.bf16 %v47_v9, %v46_v8  ;;  %v49_v12 = vld [vmem:[#allocation5 + $0x38] sm:$0xff]  ;;  %v50_v14 = vld [vmem:[#allocation5 + $0x40] sm:$0xff]  ;;  %v51_v15 = vld [vmem:[#allocation5 + $0x48] sm:$0xff]  ;;  %s262_s13 = scalar_lea.vmem %s146_s12, 128  ;;  %p267_p3 = scmp.lt.s32.totalorder %s146_s12, %s146_s12 }
  0x2a   :  { %197 = vmatpush3.bf16.msra.mxu0 %v196_v5  ;;  %v205_v13 = vpack.c.bf16 %v49_v12, %v48_v11  ;;  %v208_v16 = vpack.c.bf16 %v51_v15, %v50_v14  ;;  %v52_v17 = vld [vmem:[#allocation5 + $0x50] sm:$0x3f]  ;;  %v41_v18 = vld [vmem:[#allocation2] sm:$0xff]  ;;  %p263_p2 = scmp.ne.s32.totalorder %s146_s12, %s262_s13  ;;  %p268_p4 = scmp.lt.s32.totalorder %s262_s13, %s262_s13 }
  0x2b   :  { %198 = vmatprep.subr.bf16.mxu0 %v294_v0  ;;  %v155_v19 = vld [vmem:[%s366_s2] ss:$0 sm:$0xff] }
  0x2c   :  { %p269_p5 = por %p268_p4, %p267_p3 }
  0x2e   :  { %200 = vmatpush3.bf16.msra.mxu0 %v199_v7  ;;  %p270_p6 = pnand %p269_p5, %p263_p2 }
  0x2f   :  { %201 = vmatprep.subr.bf16.mxu0 %v294_v0 }
  0x32   :  { %203 = vmatpush3.bf16.msra.mxu0 %v202_v10 }
  0x33   :  { %204 = vmatprep.subr.bf16.mxu0 %v294_v0 }
  0x36   :  { %206 = vmatpush3.bf16.msra.mxu0 %v205_v13 }
  0x37   :  { %207 = vmatprep.subr.bf16.mxu0 %v294_v0 }
  0x3a   :  { %209 = vmatpush3.bf16.msra.mxu0 %v208_v16 }
  0x3b   :  { %190 = vmatprep.subr.mxu0 %v296_v1 }
  0x3e   :  { %191 = vmatpush3.msk.msra.mxu0 %vm64_vm1, %v52_v17 }
  0x3f   :  { %193 = vmatmul.mubr.msk.f32.vlgmr.msra.gmra.mrb[0].mxu0 %vm60_vm2, %v41_v18 }
 0x112   :  { %v134_v20 = vpop.f32.mrb[0].mxu0 }
 0x113   :  { %v135_v21 = vadd.f32 %v155_v19, %v134_v20  ;;  %v194_v22 = vpop.f32.mrb[1].mxu0 }
 0x115   :  { %138 = vst [vmem:[#allocation7] sm:$0xff] %v135_v21 }
 0x116   :  { %273 = shalt.err (!%p270_p6)
}
 0x117   :  { %s274_s16 = scalar_lea.hbm %s367_s3, 128 }
 0x118   :  { %p275_p7 = scmp.ne.s32.totalorder %s367_s3, %s274_s16  ;;  %p278_p8 = scmp.lt.u32.totalorder %s274_s16, %s367_s3 }
 0x11a   :  { %p280_p9 = pnand %p278_p8, %p275_p7 }
 0x11c   :  { %283 = shalt.err (!%p280_p9)
}
 0x11d   :  { %148 = dma.vmem_to_hbm [thread:$0]  %s146_s12, 128, %s367_s3, [#allocation4]  }
 0x11e   :  { %288 = dma.done.wait [#allocation4], 128  }
 0x11f   :  { %289 = vsyncadd [#allocation4], 4294967168 }
 0x120   :  { %152 = vsyncpa [#allocation3], 1 }
 0x121   :  { %153 = vsyncpa [#allocation6], 1 }
 0x122   :  { %154 = vsyncpa [#allocation4], 1 }

</bundles_post_ra>
